<compile_context>
chip_gen: v5e
topology: v5e:2x2
jax: 0.10.0
libtpu: 0.0.40
codegen_flags: <defaults>
</compile_context>

<pallas_src>
import functools

import jax
import jax.numpy as jnp
from jax.experimental import pallas as pl
from jax.experimental.pallas import tpu as pltpu


def _round_up(x, m):
    return ((x + m - 1) // m) * m


def _physical_vmem_bytes():
    """Per-TensorCore VMEM.  Fall back to the smallest (v7x: 64 MiB)."""
    default = 64 << 20
    try:
        info = pltpu.get_tpu_info()
        return int(getattr(info, "vmem_capacity_bytes", default)) or default
    except Exception:  # noqa: BLE001 - be robust if the query is unavailable
        return default


def _working_set_bytes(tb, s, f, h):
    """Rough f32 VMEM working set for one grid step (double-buffered I/O)."""
    m = tb * s
    return 4 * (
        2 * m * f          # double-buffered feature input block
        + m * h            # f32 tanh(x @ W) intermediate
        + m * f            # f32 attn * features product
        + 2 * tb * f       # double-buffered output block
        + f * h + 2 * h + 8  # weights / biases (tiny, resident)
    )


def _choose_tb(B, S, F, H, vmem_budget_bytes):
    """How many batches to fold into one grid step.

    TB must divide B and keep the (TB, F) output block sublane-aligned
    (TB % 8 == 0 or TB == B).  TB is capped by a VMEM byte budget; among the
    candidates that fit we prefer an even number (>=4) of grid steps so v7x's
    two TensorCores each pipeline >=2 iterations, then a 2-step split if the
    M tile stays >=128, otherwise simply the biggest block that fits.
    """
    cands = [t for t in range(1, B + 1)
             if B % t == 0 and (t % 8 == 0 or t == B)]
    fits = [t for t in cands
            if _working_set_bytes(t, S, F, H) <= vmem_budget_bytes]
    if not fits:
        return min(cands)
    pipelined = [t for t in fits if (B // t) >= 4 and (B // t) % 2 == 0]
    if pipelined:
        return max(pipelined)
    two_step = [t for t in fits if (B // t) == 2 and t * S >= 128]
    if two_step:
        return max(two_step)
    return max(fits)


def attention_head_kernel(feat_ref, w_ref, bw_ref, v_ref, bv_ref, out_ref,
                          *, s_real):
    # feat_ref: (TB, Sp, F)  w_ref: (F, H)  bw_ref: (1, H)  v_ref: (1, H)
    # bv_ref:   (1, 1) in SMEM              out_ref: (TB, F)
    TB, Sp, F = feat_ref.shape

    feat = feat_ref[...].astype(jnp.float32)               # (TB, Sp, F)
    # Fold batch into the matmul M dimension; Sp % 8 == 0 so this is a free
    # sublane merge (no hidden retile copy).
    feat2d = feat.reshape(TB * Sp, F)                       # (TB*Sp, F)

    # att = tanh(features @ W + b_W) -- one MXU matmul with M = TB*Sp.
    att = jnp.tanh(
        jnp.dot(feat2d, w_ref[...], preferred_element_type=jnp.float32)
        + bw_ref[...]
    )                                                       # (TB*Sp, H) f32

    # score = att @ V + b_V as a VPU broadcast-mul + lane (XLU) reduction; an
    # MXU matmul with N=1 would waste 127/128 output columns.
    score = jnp.sum(att * v_ref[...], axis=-1, keepdims=True) + bv_ref[0, 0]
    score = score.reshape(TB, Sp, 1)                        # (TB, Sp, 1)

    # Mask padded sequence rows out of the softmax (static no-op when S%8==0).
    if s_real < Sp:
        row = jax.lax.broadcasted_iota(jnp.int32, (TB, Sp, 1), 1)
        score = jnp.where(row < s_real, score, jnp.float32(-1e30))

    # Max-stabilized softmax over the sequence axis (PyTorch dim=1), exact
    # divide (approx reciprocal removed per review).
    m = jnp.max(score, axis=1, keepdims=True)               # (TB, 1, 1)
    e = jnp.exp(score - m)                                  # (TB, Sp, 1)
    attn = e / jnp.sum(e, axis=1, keepdims=True)            # (TB, Sp, 1)

    # context_vector = sum_over_seq(attn * features)        -> (TB, F)
    out_ref[...] = jnp.sum(attn * feat, axis=1).astype(out_ref.dtype)


def attention_head(features, w, bw, v, bv):
    """features: (B, S, F); w: (F, H); bw: (1, H); v: (H, 1); bv: (1, 1)."""
    B, S, F = features.shape
    H = w.shape[1]
    dtype = features.dtype

    # Features stay unpadded along F (block last dim == full array dim), which
    # removes the old full HBM write+read of a padded copy.  Only the sequence
    # axis is padded to a sublane multiple of 8 when necessary; padded rows
    # are masked out of the softmax inside the kernel (padded features are 0).
    Sp = _round_up(S, 8)
    feat_in = features
    if Sp != S:
        feat_in = jnp.pad(features, ((0, 0), (0, Sp - S), (0, 0)))

    v_row = jnp.reshape(v, (1, H))                          # (1, H)

    phys = _physical_vmem_bytes()
    budget = int(0.70 * phys)           # headroom for Mosaic scratch / spills
    TB = _choose_tb(B, Sp, F, H, budget)
    ws = _working_set_bytes(TB, Sp, F, H)
    vmem_limit = int(min(max(budget, int(1.25 * ws)), int(0.90 * phys)))

    grid = (B // TB,)

    # TODO(synk): if a single (TB_min, Sp, F) block ever exceeds VMEM, tile the
    # sequence axis with an online-softmax accumulator; the current single-pass
    # softmax needs the full sequence resident per grid step.
    kernel = functools.partial(attention_head_kernel, s_real=S)
    out = pl.pallas_call(
        kernel,
        out_shape=jax.ShapeDtypeStruct((B, F), dtype),
        grid_spec=pltpu.PrefetchScalarGridSpec(
            num_scalar_prefetch=0,
            grid=grid,
            in_specs=[
                pl.BlockSpec((TB, Sp, F), lambda b: (b, 0, 0)),   # features
                pl.BlockSpec((F, H), lambda b: (0, 0)),           # W
                pl.BlockSpec((1, H), lambda b: (0, 0)),           # b_W
                pl.BlockSpec((1, H), lambda b: (0, 0)),           # V (row)
                # Scalar b_V: SMEM scalar, not a padded (8,128) VMEM tile.
                pl.BlockSpec(memory_space=pltpu.MemorySpace.SMEM),
            ],
            out_specs=pl.BlockSpec((TB, F), lambda b: (b, 0)),
        ),
        compiler_params=pltpu.CompilerParams(
            dimension_semantics=("parallel",),
            vmem_limit_bytes=vmem_limit,
        ),
    )(feat_in, w, bw, v_row, bv)

    return out


def attention_head_ref(features, w, bw, v, bv):
    att = jnp.tanh(
        jnp.einsum("bsf,fh->bsh", features, w,
                   precision=jax.lax.Precision.HIGHEST) + bw)      # (B, S, H)
    score = jnp.einsum("bsh,ho->bso", att, v,
                       precision=jax.lax.Precision.HIGHEST) + bv[0, 0]
    attn = jax.nn.softmax(score, axis=1)
    return jnp.sum(attn * features, axis=1)                        # (B, F)


if __name__ == "__main__":
    B, S = 2, 8
    in_features, hidden_dim = 32, 32

    key = jax.random.PRNGKey(0)
    k_feat, k_w, k_v = jax.random.split(key, 3)

    features = jax.random.normal(k_feat, (B, S, in_features), dtype=jnp.float32)

    # nn.Linear(in_features, hidden_dim): weight (H, F) ~ N(0, 0.01), bias 0.
    # Stored transposed (F, H) so the kernel computes feat @ W.
    w = (0.01 * jax.random.normal(k_w, (hidden_dim, in_features), jnp.float32)).T
    bw = jnp.zeros((1, hidden_dim), jnp.float32)
    # nn.Linear(hidden_dim, 1): weight (1, H) ~ N(0, 0.01), bias 0 -> stored (H, 1).
    v = (0.01 * jax.random.normal(k_v, (1, hidden_dim), jnp.float32)).T
    bv = jnp.zeros((1, 1), jnp.float32)

    out = attention_head(features, w, bw, v, bv)
    jax.block_until_ready(out)

    ref = attention_head_ref(features, w, bw, v, bv)
    assert out.shape == (B, in_features)
    assert jnp.allclose(out, ref, atol=1e-4, rtol=1e-4)

    print("KERNEL_OK")
</pallas_src>

<mosaic_0001>
module attributes {stable_mosaic.version = 11 : i64} {
  func.func @attention_head_kernel(%arg0: i32, %arg1: memref<2x8x32xf32, #tpu.memory_space<vmem>>, %arg2: memref<32x32xf32, #tpu.memory_space<vmem>>, %arg3: memref<1x32xf32, #tpu.memory_space<vmem>>, %arg4: memref<1x32xf32, #tpu.memory_space<vmem>>, %arg5: memref<1x1xf32, #tpu.memory_space<smem>>, %arg6: memref<2x32xf32, #tpu.memory_space<vmem>>) attributes {dimension_semantics = [#tpu.dimension_semantics<parallel>], iteration_bounds = array<i64: 1>, scalar_prefetch = 0 : i64, scratch_operands = 0 : i64, tpu.core_type = #tpu.core_type<tc>, window_params = [{transform_indices = @transform_0, window_bounds = array<i64: 2, 8, 32>}, {pipeline_mode = #tpu.pipeline_mode<synchronous>, transform_indices = @transform_1, window_bounds = array<i64: 32, 32>}, {pipeline_mode = #tpu.pipeline_mode<synchronous>, transform_indices = @transform_2, window_bounds = array<i64: 1, 32>}, {pipeline_mode = #tpu.pipeline_mode<synchronous>, transform_indices = @transform_3, window_bounds = array<i64: 1, 32>}, {transform_indices = @transform_4, window_bounds = array<i64: 1, 1>}, {transform_indices = @transform_5, window_bounds = array<i64: 2, 32>}]} {
    %c0 = arith.constant 0 : index
    %c0_0 = arith.constant 0 : index
    %c0_1 = arith.constant 0 : index
    %0 = vector.load %arg1[%c0, %c0_0, %c0_1] : memref<2x8x32xf32, #tpu.memory_space<vmem>>, vector<2x8x32xf32>
    %1 = vector.shape_cast %0 : vector<2x8x32xf32> to vector<16x32xf32>
    %c0_2 = arith.constant 0 : index
    %c0_3 = arith.constant 0 : index
    %2 = vector.load %arg2[%c0_2, %c0_3] : memref<32x32xf32, #tpu.memory_space<vmem>>, vector<32x32xf32>
    %cst = arith.constant dense<0.000000e+00> : vector<16x32xf32>
    %3 = tpu.matmul %1, %2, %cst {dimension_numbers = #tpu.dot_dimension_numbers<[1], [0], [0], [1], [0, 0, 1, 1], [], []>} : vector<16x32xf32>, vector<32x32xf32>, vector<16x32xf32> -> vector<16x32xf32>
    %c0_4 = arith.constant 0 : index
    %c0_5 = arith.constant 0 : index
    %4 = vector.load %arg3[%c0_4, %c0_5] : memref<1x32xf32, #tpu.memory_space<vmem>>, vector<1x32xf32>
    %5 = vector.broadcast %4 : vector<1x32xf32> to vector<16x32xf32>
    %6 = arith.addf %3, %5 : vector<16x32xf32>
    %7 = math.tanh %6 : vector<16x32xf32>
    %c0_6 = arith.constant 0 : index
    %c0_7 = arith.constant 0 : index
    %8 = vector.load %arg4[%c0_6, %c0_7] : memref<1x32xf32, #tpu.memory_space<vmem>>, vector<1x32xf32>
    %9 = vector.broadcast %8 : vector<1x32xf32> to vector<16x32xf32>
    %10 = arith.mulf %7, %9 : vector<16x32xf32>
    %cst_8 = arith.constant dense<0.000000e+00> : vector<16xf32>
    %11 = vector.multi_reduction <add>, %10, %cst_8 [1] : vector<16x32xf32> to vector<16xf32>
    %12 = vector.shape_cast %11 : vector<16xf32> to vector<16x1xf32>
    %c0_9 = arith.constant 0 : index
    %c0_10 = arith.constant 0 : index
    %13 = memref.load %arg5[%c0_9, %c0_10] : memref<1x1xf32, #tpu.memory_space<smem>>
    %14 = vector.broadcast %13 : f32 to vector<16x1xf32>
    %15 = arith.addf %12, %14 : vector<16x1xf32>
    %16 = vector.shape_cast %15 : vector<16x1xf32> to vector<2x8x1xf32>
    %cst_11 = arith.constant dense<0xFF800000> : vector<2x1xf32>
    %17 = vector.multi_reduction <maximumf>, %16, %cst_11 [1] : vector<2x8x1xf32> to vector<2x1xf32>
    %18 = vector.shape_cast %17 : vector<2x1xf32> to vector<2x1x1xf32>
    %19 = vector.broadcast %18 : vector<2x1x1xf32> to vector<2x8x1xf32>
    %20 = arith.subf %16, %19 : vector<2x8x1xf32>
    %21 = math.exp %20 : vector<2x8x1xf32>
    %cst_12 = arith.constant dense<0.000000e+00> : vector<2x1xf32>
    %22 = vector.multi_reduction <add>, %21, %cst_12 [1] : vector<2x8x1xf32> to vector<2x1xf32>
    %23 = vector.shape_cast %22 : vector<2x1xf32> to vector<2x1x1xf32>
    %24 = vector.broadcast %23 : vector<2x1x1xf32> to vector<2x8x1xf32>
    %25 = arith.divf %21, %24 : vector<2x8x1xf32>
    %26 = vector.broadcast %25 : vector<2x8x1xf32> to vector<2x8x32xf32>
    %27 = arith.mulf %26, %0 : vector<2x8x32xf32>
    %cst_13 = arith.constant dense<0.000000e+00> : vector<2x32xf32>
    %28 = vector.multi_reduction <add>, %27, %cst_13 [1] : vector<2x8x32xf32> to vector<2x32xf32>
    %c0_14 = arith.constant 0 : index
    %c0_15 = arith.constant 0 : index
    %29 = vector.load %arg6[%c0_14, %c0_15] : memref<2x32xf32, #tpu.memory_space<vmem>>, vector<2x32xf32>
    tpu.vector_store %arg6[%c0_14, %c0_15], %28 {strides = array<i32>} : memref<2x32xf32, #tpu.memory_space<vmem>>, vector<2x32xf32>,
    return
  }
  func.func @transform_0(%arg0: i32) -> (i32, i32, i32) {
    %c0_i32 = arith.constant 0 : i32
    %c0_i32_0 = arith.constant 0 : i32
    %c0_i32_1 = arith.constant 0 : i32
    return %arg0, %c0_i32, %c0_i32_0 : i32, i32, i32
  }
  func.func @transform_1(%arg0: i32) -> (i32, i32) {
    %c0_i32 = arith.constant 0 : i32
    %c0_i32_0 = arith.constant 0 : i32
    %c0_i32_1 = arith.constant 0 : i32
    return %c0_i32, %c0_i32_0 : i32, i32
  }
  func.func @transform_2(%arg0: i32) -> (i32, i32) {
    %c0_i32 = arith.constant 0 : i32
    %c0_i32_0 = arith.constant 0 : i32
    %c0_i32_1 = arith.constant 0 : i32
    return %c0_i32, %c0_i32_0 : i32, i32
  }
  func.func @transform_3(%arg0: i32) -> (i32, i32) {
    %c0_i32 = arith.constant 0 : i32
    %c0_i32_0 = arith.constant 0 : i32
    %c0_i32_1 = arith.constant 0 : i32
    return %c0_i32, %c0_i32_0 : i32, i32
  }
  func.func @transform_4(%arg0: i32) -> (i32, i32) {
    %c0_i32 = arith.constant 0 : i32
    %c0_i32_0 = arith.constant 0 : i32
    %c0_i32_1 = arith.constant 0 : i32
    return %c0_i32, %c0_i32_0 : i32, i32
  }
  func.func @transform_5(%arg0: i32) -> (i32, i32) {
    %c0_i32 = arith.constant 0 : i32
    %c0_i32_0 = arith.constant 0 : i32
    return %arg0, %c0_i32 : i32, i32
  }
}

</mosaic_0001>

<bundles_post_ra>
// kernel: tpu_custom_call.1
= control target key start
LH: loop header
LB: loop body
LE: loop exit
PB: predicated region body
PF: predicated region fallthrough
CT: control target
= control target key end

     0   :  { %11 = vsyncpa [#allocation4], 0  ;;  %s383_s0 = inlined_call_operand.hbm [shape: f32[2,8,32], index: 0, kind: input, shape index: {}]   ;;  %s384_s1 = inlined_call_operand.hbm [shape: f32[32,32], index: 1, kind: input, shape index: {}]   ;;  %s385_s2 = inlined_call_operand.vmem [shape: f32[1,32], index: 2, kind: input, shape index: {}]   ;;  %s386_s3 = inlined_call_operand.vmem [shape: f32[1,32], index: 3, kind: input, shape index: {}]   ;;  %s387_s4 = inlined_call_operand.<no memory space> [shape: f32[1,1], index: 4, kind: input, shape index: {}]   ;;  %s388_s5 = inlined_call_operand.hbm [shape: f32[2,32], index: 5, kind: output, shape index: {}]  }
   0x1   :  { %12 = vsyncpa [#allocation7], 0 }
   0x2   :  { %13 = vsyncpa [#allocation5], 0  ;;  %s18_s20 = sshll.u32 %s383_s0, 4  ;;  %s316_s21 = smov [#allocation3]   ;;  %s19_s20 = int_to_ptr.hbm [resolvable:$true] %s18_s20 }
   0x3   :  { %s20_s22 = sshll.u32 %s316_s21, 4  ;;  %s31_s25 = sshll.u32 %s384_s1, 4  ;;  %s21_s22 = int_to_ptr.vmem [resolvable:$true] %s20_s22  ;;  %s32_s25 = int_to_ptr.hbm [resolvable:$true] %s31_s25 }
   0x4   :  { %s317_s26 = smov 128   ;;  %s318_s27 = smov 8  }
   0x5   :  { %26 = dma.hbm_to_vmem [thread:$0]  %s19_s20, 256, %s21_s22, [#allocation4], %s317_s26, %s317_s26, %s318_s27  }
   0x6   :  { %s319_s28 = smov [#allocation6]  }
   0x7   :  { %s33_s29 = sshll.u32 %s319_s28, 4  ;;  %s34_s29 = int_to_ptr.vmem [resolvable:$true] %s33_s29 }
   0x8   :  { %39 = dma.hbm_to_vmem [thread:$0]  %s32_s25, 512, %s34_s29, [#allocation7], %s317_s26, %s317_s26, %s318_s27  }
   0x9   :  { %310 = dma.done.wait [#allocation4], 256  }
   0xa   :  { %311 = vsyncadd [#allocation4], 4294967040 }
   0xb   :  { %312 = dma.done.wait [#allocation7], 512  }
   0xc   :  { %313 = vsyncadd [#allocation7], 4294966784  ;;  %v59_v0 = vld [vmem:[#allocation6 + $0x18] sm:$0xff]  ;;  %v58_v1 = vld [vmem:[#allocation6 + $0x10] sm:$0xff]  ;;  %vm64_vm0 = vcmask 261120   ;;  %v109_v18 = vstv %s387_s4  ;;  %s202_s10 = sshll.u32 %s388_s5, 4  ;;  %s203_s10 = int_to_ptr.hbm [resolvable:$true] %s202_s10 }
   0xd   :  { %83 = vmatpush.msra.mxu0 %v59_v0  ;;  %215 = vmatpush.msra.mxu1 %v59_v0  ;;  %v57_v2 = vld [vmem:[#allocation6 + $0x8] sm:$0xff]  ;;  %v56_v3 = vld [vmem:[#allocation6] sm:$0xff]  ;;  %v357_v4 = vld [vmem:[#allocation3] sm:$0xff]  ;;  %vm190_vm9 = vcmask 1041409   ;;  %vm193_vm10 = vcmask 254976  }
   0xe   :  { %v359_v5 = vld [vmem:[#allocation3 + $0x8] sm:$0xff]  ;;  %v224_v6 = vld [vmem:[%s385_s2] ss:$0 sm:$0xff] }
   0xf   :  { %84 = vmatpush.msra.mxu0 %v58_v1  ;;  %216 = vmatpush.msra.mxu1 %v58_v1  ;;  %v225_v11 = vld [vmem:[%s386_s3] ss:$0 sm:$0xff]  ;;  %s320_s3 = smov [#allocation8]  }
  0x10   :  { %s200_s4 = sshll.u32 %s320_s3, 4  ;;  %s201_s4 = int_to_ptr.vmem [resolvable:$true] %s200_s4 }
  0x11   :  { %85 = vmatpush.msra.mxu0 %v57_v2  ;;  %217 = vmatpush.msra.mxu1 %v57_v2 }
  0x13   :  { %86 = vmatpush.msra.mxu0 %v56_v3  ;;  %218 = vmatpush.msra.mxu1 %v56_v3 }
  0x14   :  { %213 = vmatmul.msk.f32.vlgmr.msra.gmra.mxu0 %vm64_vm0, %v357_v4  ;;  %214 = vmatmul.msk.f32.vlgmr.msra.gmra.mxu1 %vm64_vm0, %v359_v5 }
  0x91   :  { %v88_v7 = vpop.f32.mrf.mxu0  ;;  %v91_v8 = vpop.f32.mrf.mxu1 }
  0x92   :  { %v89_v9 = vadd.f32 %v224_v6, %v88_v7  ;;  %v92_v10 = vadd.f32 %v224_v6, %v91_v8 }
  0x94   :  { %226 = vtanh.f32 %v89_v9 }
  0x95   :  { %228 = vtanh.f32 %v92_v10 }
  0x9a   :  { %v227_v12 = vpop.eup %226 }
  0x9b   :  { %v100_v13 = vmul.f32 %v227_v12, %v225_v11  ;;  %v229_v14 = vpop.eup %228 }
  0x9c   :  { %v101_v16 = vmul.f32 %v229_v14, %v225_v11 }
  0x9d   :  { %v102_v15 = vsel %vm64_vm0, %v100_v13, 0.0 }
  0x9e   :  { %103 = vadd.xlane.f32.xlu0 %v102_v15  ;;  %v105_v17 = vsel %vm64_vm0, %v101_v16, 0.0 }
  0xa6   :  { %106 = vadd.xlane.f32.xlu0 %v105_v17 }
 0x111   :  { %v104_v19 = vpop.xlane.xlu0 %103 }
 0x112   :  { %v110_v20 = vadd.f32 %v109_v18, %v104_v19 }
 0x114   :  { %v112_v21 = vrot.slane %v110_v20, 4 }
 0x116   :  { %v113_v22 = vmax.f32 %v110_v20, %v112_v21 }
 0x118   :  { %v114_v23 = vrot.slane %v113_v22, 2 }
 0x119   :  { %v107_v24 = vpop.xlane.xlu0 %106 }
 0x11a   :  { %v115_v25 = vmax.f32 %v113_v22, %v114_v23  ;;  %v111_v26 = vadd.f32 %v109_v18, %v107_v24 }
 0x11c   :  { %v116_v27 = vrot.slane %v115_v25, 1  ;;  %v118_v28 = vrot.slane %v111_v26, 4 }
 0x11e   :  { %v117_v29 = vmax.f32 %v115_v25, %v116_v27  ;;  %v119_v30 = vmax.f32 %v111_v26, %v118_v28 }
 0x120   :  { %v124_v31 = vsub.f32 %v110_v20, %v117_v29  ;;  %v120_v32 = vrot.slane %v119_v30, 2 }
 0x122   :  { %v126_v33 = vmul.f32 1.442695, %v124_v31  ;;  %v121_v34 = vmax.f32 %v119_v30, %v120_v32 }
 0x124   :  { %230 = vpow2.f32 %v126_v33  ;;  %v122_v35 = vrot.slane %v121_v34, 1 }
 0x126   :  { %v123_v36 = vmax.f32 %v121_v34, %v122_v35 }
 0x128   :  { %v125_v37 = vsub.f32 %v111_v26, %v123_v36 }
 0x12a   :  { %v231_v38 = vpop.eup %230  ;;  %v128_v39 = vmul.f32 1.442695, %v125_v37 }
 0x12b   :  { %v130_v40 = vrot.slane %v231_v38, 4 }
 0x12c   :  { %232 = vpow2.f32 %v128_v39 }
 0x12d   :  { %v131_v41 = vadd.f32 %v231_v38, %v130_v40 }
 0x12f   :  { %v132_v42 = vrot.slane %v131_v41, 2 }
 0x131   :  { %v133_v43 = vadd.f32 %v132_v42, %v131_v41 }
 0x132   :  { %v233_v44 = vpop.eup %232 }
 0x133   :  { %v134_v45 = vrot.slane %v133_v43, 1  ;;  %v136_v46 = vrot.slane %v233_v44, 4 }
 0x135   :  { %v135_v47 = vadd.f32 %v134_v45, %v133_v43  ;;  %v137_v48 = vadd.f32 %v233_v44, %v136_v46 }
 0x137   :  { %234 = vrcp.f32 %v135_v47  ;;  %v138_v49 = vrot.slane %v137_v48, 2  ;;  %v153_v56 = vand.u32 2147483648, %v135_v47  ;;  %v151_v58 = vand.u32 2147483647, %v135_v47 }
 0x138   :  { %vm147_vm2 = vweird.f32 %v135_v47 }
 0x139   :  { %v139_v50 = vadd.f32 %v138_v49, %v137_v48  ;;  %v154_v61 = vor.u32 1.1754944e-38, %v153_v56  ;;  %vm152_vm4 = vcmp.eq.f32.partialorder %v151_v58, 8.507059e+37 }
 0x13b   :  { %v140_v51 = vrot.slane %v139_v50, 1 }
 0x13d   :  { %v235_v52 = vpop.eup %234  ;;  %v141_v53 = vadd.f32 %v140_v51, %v139_v50 }
 0x13e   :  { %v143_v54 = vmul.f32 %v235_v52, %v135_v47  ;;  %vm148_vm1 = vweird.f32 %v235_v52 }
 0x13f   :  { %236 = vrcp.f32 %v141_v53  ;;  %vm149_vm3 = vmor %vm147_vm2, %vm148_vm1  ;;  %v168_v3 = vand.u32 2147483648, %v141_v53  ;;  %v166_v7 = vand.u32 2147483647, %v141_v53  ;;  %vm162_vm6 = vweird.f32 %v141_v53 }
 0x140   :  { %v144_v55 = vsub.f32 1.0, %v143_v54 }
 0x141   :  { %v169_v11 = vor.u32 1.1754944e-38, %v168_v3  ;;  %vm167_vm8 = vcmp.eq.f32.partialorder %v166_v7, 8.507059e+37 }
 0x142   :  { %v145_v57 = vmul.f32 %v235_v52, %v144_v55 }
 0x144   :  { %v146_v59 = vadd.f32 %v235_v52, %v145_v57 }
 0x145   :  { %v237_v60 = vpop.eup %236 }
 0x146   :  { %v150_v62 = vsel %vm149_vm3, %v235_v52, %v146_v59  ;;  %v158_v63 = vmul.f32 %v237_v60, %v141_v53  ;;  %vm163_vm5 = vweird.f32 %v237_v60 }
 0x147   :  { %v155_v0 = vsel %vm152_vm4, %v154_v61, %v150_v62  ;;  %vm164_vm7 = vmor %vm162_vm6, %vm163_vm5 }
 0x148   :  { %v156_v1 = vmul.f32 %v231_v38, %v155_v0  ;;  %v159_v2 = vsub.f32 1.0, %v158_v63 }
 0x14a   :  { %v160_v6 = vmul.f32 %v237_v60, %v159_v2  ;;  %v172_v8 = vmul.f32 %v156_v1, %v357_v4 }
 0x14c   :  { %v161_v9 = vadd.f32 %v237_v60, %v160_v6  ;;  %v174_v10 = vsel %vm64_vm0, %v172_v8, 0.0 }
 0x14d   :  { %v175_v12 = vrot.slane %v174_v10, 4 }
 0x14e   :  { %v165_v13 = vsel %vm164_vm7, %v237_v60, %v161_v9 }
 0x14f   :  { %v170_v14 = vsel %vm167_vm8, %v169_v11, %v165_v13  ;;  %v176_v15 = vadd.f32 %v175_v12, %v174_v10 }
 0x150   :  { %v171_v16 = vmul.f32 %v233_v44, %v170_v14 }
 0x151   :  { %v177_v18 = vrot.slane %v176_v15, 2 }
 0x152   :  { %v173_v17 = vmul.f32 %v171_v16, %v359_v5 }
 0x153   :  { %v178_v21 = vadd.f32 %v177_v18, %v176_v15 }
 0x154   :  { %v181_v19 = vsel %vm64_vm0, %v173_v17, 0.0 }
 0x155   :  { %v182_v20 = vrot.slane %v181_v19, 4  ;;  %v179_v23 = vrot.slane %v178_v21, 1 }
 0x157   :  { %v183_v4 = vadd.f32 %v182_v20, %v181_v19  ;;  %v180_v26 = vadd.f32 %v179_v23, %v178_v21 }
 0x159   :  { %v184_v22 = vrot.slane %v183_v4, 2 }
 0x15b   :  { %v185_v24 = vadd.f32 %v184_v22, %v183_v4 }
 0x15d   :  { %v186_v25 = vrot.slane %v185_v24, 1 }
 0x15f   :  { %v187_v27 = vadd.f32 %v186_v25, %v185_v24 }
 0x161   :  { %v191_v5 = vsel %vm190_vm9, %v187_v27, %v180_v26 }
 0x162   :  { %194 = vst.msk [vmem:[#allocation8] sm:$0x3] %vm193_vm10, %v191_v5 }
 0x163   :  { %205 = dma.vmem_to_hbm [thread:$0]  %s201_s4, 32, %s203_s10, [#allocation5]  }
 0x164   :  { %314 = dma.done.wait [#allocation5], 32  }
 0x165   :  { %315 = vsyncadd [#allocation5], 4294967264 }
 0x166   :  { %210 = vsyncpa [#allocation4], 1 }
 0x167   :  { %211 = vsyncpa [#allocation7], 1 }
 0x168   :  { %212 = vsyncpa [#allocation5], 1 }

</bundles_post_ra>
